<compile_context>
chip_gen: v6e
topology: v6e:2x2x1
jax: 0.10.0
libtpu: 0.0.40
codegen_flags: <defaults>
</compile_context>

<pallas_src>
import numpy as np
import jax
import jax.numpy as jnp
from jax import lax
from jax.experimental import pallas as pl
from jax.experimental.pallas import tpu as pltpu


def _round_up(n, m):
    return ((n + m - 1) // m) * m


# ----------------------------------------------------------------------------
# Pallas kernel: two edge->edge gathers + edge_mlp (Linear/BN/ReLU x2), fused.
# All weight feature dims are pre-padded to multiples of 128 lanes (once, in
# prepare_edge_edge_params); x arrives unpadded and is cast to bf16 in-kernel.
# No lane<->sublane relayouts: straight MXU dots, f32 accumulation.
# ----------------------------------------------------------------------------
def edge_edge_kernel(x_ref, m0_ref, m1_ref, w1x_ref, w1ua_ref, w1ub_ref,
                     w1va_ref, w1vb_ref, w2_ref, g1_ref, b1_ref, g2_ref,
                     b2_ref, o_ref):
    f32, bf16 = jnp.float32, jnp.bfloat16

    x = x_ref[...].astype(bf16)          # [R, H]
    m0 = m0_ref[...]                     # [R, R] bf16 (exact 0/1)
    m1 = m1_ref[...]                     # [R, R] bf16 (exact 0/1)

    # ---- gather #1 (ptens 1->1 over edge subgraph): a = M0 x, b = M1 x ----
    a = jnp.dot(m0, x, preferred_element_type=f32)       # [R, H] f32
    b = jnp.dot(m1, x, preferred_element_type=f32)       # [R, H] f32
    a = a.astype(bf16)
    b = b.astype(bf16)

    # ---- gather #2 fused algebraically with the first Linear's row blocks:
    #      h = x W_x + M0 (a W_ua + b W_ub) + M1 (a W_va + b W_vb)        ----
    t_u = (jnp.dot(a, w1ua_ref[...], preferred_element_type=f32)
           + jnp.dot(b, w1ub_ref[...], preferred_element_type=f32))      # [R, IP]
    t_v = (jnp.dot(a, w1va_ref[...], preferred_element_type=f32)
           + jnp.dot(b, w1vb_ref[...], preferred_element_type=f32))      # [R, IP]
    h = (jnp.dot(x, w1x_ref[...], preferred_element_type=f32)
         + jnp.dot(m0, t_u.astype(bf16), preferred_element_type=f32)
         + jnp.dot(m1, t_v.astype(bf16), preferred_element_type=f32))    # [R, IP]

    # ---- BatchNorm1d (training-mode batch stats, eps=1e-5, two-pass) + ReLU
    mu1 = jnp.mean(h, axis=0, keepdims=True)
    d1 = h - mu1
    var1 = jnp.mean(d1 * d1, axis=0, keepdims=True)
    h = jnp.maximum(d1 * lax.rsqrt(var1 + 1e-5) * g1_ref[...] + b1_ref[...],
                    0.0)

    # ---- second Linear + BatchNorm1d + ReLU ----
    o = jnp.dot(h.astype(bf16), w2_ref[...], preferred_element_type=f32)  # [R, OP]
    mu2 = jnp.mean(o, axis=0, keepdims=True)
    d2 = o - mu2
    var2 = jnp.mean(d2 * d2, axis=0, keepdims=True)
    o_ref[...] = jnp.maximum(d2 * lax.rsqrt(var2 + 1e-5) * g2_ref[...]
                             + b2_ref[...], 0.0)


# ----------------------------------------------------------------------------
# One-time (per-graph / per-weight-update) parameter preparation: pad all
# weight feature dims to 128 lanes, cast MXU inputs to bf16 (lossless for the
# 0/1 operators), slice W1 into its five row blocks.  Hoisted out of the
# per-call forward path.
# ----------------------------------------------------------------------------
def prepare_edge_edge_params(m0, m1, w1, w2, g1, b1, g2, b2):
    inner, H = w2.shape
    assert w1.shape == (5 * H, inner)
    LANE = 128
    IP = _round_up(inner, LANE)      # padded inner width
    OP = _round_up(H, LANE)          # padded output width

    bf16, f32 = jnp.bfloat16, jnp.float32

    def pad2(a, rows, cols):
        return jnp.pad(a, ((0, rows - a.shape[0]), (0, cols - a.shape[1])))

    # Row blocks of W1, matching z = [x | M0 a | M0 b | M1 a | M1 b].
    w1_x = w1[0 * H:1 * H]
    w1_ua = w1[1 * H:2 * H]
    w1_ub = w1[2 * H:3 * H]
    w1_va = w1[3 * H:4 * H]
    w1_vb = w1[4 * H:5 * H]

    params = (
        m0.astype(bf16),                       # [R, R]
        m1.astype(bf16),                       # [R, R]
        pad2(w1_x, H, IP).astype(bf16),        # [H, IP]
        pad2(w1_ua, H, IP).astype(bf16),
        pad2(w1_ub, H, IP).astype(bf16),
        pad2(w1_va, H, IP).astype(bf16),
        pad2(w1_vb, H, IP).astype(bf16),
        pad2(w2, IP, OP).astype(bf16),         # [IP, OP]
        pad2(g1, 1, IP).astype(f32),
        pad2(b1, 1, IP).astype(f32),
        pad2(g2, 1, OP).astype(f32),
        pad2(b2, 1, OP).astype(f32),
    )
    return jax.tree_util.tree_map(jax.device_put, params)


@jax.jit
def edge_edge_forward(x, params):
    (m0_bf, m1_bf, w1x_p, w1ua_p, w1ub_p, w1va_p, w1vb_p, w2_p,
     g1_p, b1_p, g2_p, b2_p) = params
    R, H = x.shape
    IP = w2_p.shape[0]
    OP = w2_p.shape[1]

    args = (x, m0_bf, m1_bf, w1x_p, w1ua_p, w1ub_p, w1va_p, w1vb_p, w2_p,
            g1_p, b1_p, g2_p, b2_p)

    # Explicit VMEM budget: double-buffered I/O + f32 intermediates, with
    # headroom, clamped to v7x's 64 MiB so it is valid on all generations.
    in_bytes = sum(int(np.prod(a.shape)) * a.dtype.itemsize for a in args)
    out_bytes = R * OP * 4
    scratch_bytes = R * (2 * H + 3 * IP + OP) * 4
    vmem_limit = int(min(max(2 * (in_bytes + out_bytes) + 2 * scratch_bytes,
                             8 << 20), 64 << 20))

    out_p = pl.pallas_call(
        edge_edge_kernel,
        out_shape=jax.ShapeDtypeStruct((R, OP), jnp.float32),
        grid=(1,),
        in_specs=[pl.BlockSpec(a.shape, lambda i: (0, 0)) for a in args],
        out_specs=pl.BlockSpec((R, OP), lambda i: (0, 0)),
        compiler_params=pltpu.CompilerParams(
            dimension_semantics=("arbitrary",),
            vmem_limit_bytes=vmem_limit),
    )(*args)

    return out_p[:, :H]


# ----------------------------------------------------------------------------
# Glue: build the dense linear operators for the ptens 1->1 edge gather.
# Row r = 2*e + slot carries the feature of atom edges[e][slot] on edge e.
# For target edge t, source edge s, intersection I = dom(t) & dom(s):
#   map0 (identity on I):    out[t, a] += x[s, a]               for a in I
#   map1 (reduce+broadcast): out[t, a] += sum_{b in I} x[s, b]  for a in I
# Both operators are symmetric for this gather, which the kernel exploits.
# ----------------------------------------------------------------------------
def build_gather_operators(edges):
    E = len(edges)
    R = 2 * E
    atom = np.array([edges[e][s] for e in range(E) for s in range(2)])
    edge_of = np.repeat(np.arange(E), 2)
    dom = [set(edges[e]) for e in range(E)]

    M0 = np.zeros((R, R), np.float32)
    M1 = np.zeros((R, R), np.float32)
    for rt in range(R):
        t, alpha = edge_of[rt], atom[rt]
        for rs in range(R):
            s, beta = edge_of[rs], atom[rs]
            if alpha == beta:
                M0[rt, rs] = 1.0
            if (alpha in dom[s]) and (beta in dom[t]):
                M1[rt, rs] = 1.0
    return jnp.asarray(M0), jnp.asarray(M1)


# Pure-JAX f32 reference (same math, explicit concatenation) — semantic spec.
def reference(x, m0, m1, w1, w2, g1, b1, g2, b2):
    def gather(v):
        return jnp.concatenate([m0 @ v, m1 @ v], axis=-1)

    def bn_relu(h, g, b):
        mu = jnp.mean(h, axis=0, keepdims=True)
        var = jnp.mean((h - mu) ** 2, axis=0, keepdims=True)
        return jnp.maximum((h - mu) * lax.rsqrt(var + 1e-5) * g + b, 0.0)

    z = jnp.concatenate([x, gather(gather(x))], axis=-1)   # [R, 5H]
    h = bn_relu(z @ w1, g1, b1)
    return bn_relu(h @ w2, g2, b2)


# Precision-matched reference: mirrors the kernel's dot structure (bf16 MXU
# inputs / f32 accumulation) and two-pass BN variance (tight check).
def reference_bf16(x, m0, m1, w1, w2, g1, b1, g2, b2):
    bf, f32 = jnp.bfloat16, jnp.float32
    H = x.shape[1]

    def bdot(p, q):
        return jnp.dot(p.astype(bf), q.astype(bf), preferred_element_type=f32)

    def bn_relu(h, g, b):
        mu = jnp.mean(h, axis=0, keepdims=True)
        d = h - mu
        var = jnp.mean(d * d, axis=0, keepdims=True)
        return jnp.maximum(d * lax.rsqrt(var + 1e-5) * g + b, 0.0)

    a = bdot(m0, x)
    b_ = bdot(m1, x)
    w1_x, w1_ua, w1_ub, w1_va, w1_vb = (w1[i * H:(i + 1) * H] for i in range(5))
    t_u = bdot(a, w1_ua) + bdot(b_, w1_ub)
    t_v = bdot(a, w1_va) + bdot(b_, w1_vb)
    h = bdot(x, w1_x) + bdot(m0, t_u) + bdot(m1, t_v)
    h = bn_relu(h, g1, b1)
    return bn_relu(bdot(h, w2), g2, b2)


if __name__ == "__main__":
    hidden_dim = 32
    inner = 2 * hidden_dim                     # _inner_mlp_mult = 2

    # Small graph: an 8-node cycle -> 8 edges -> R = 16 ptensor rows.
    n_nodes = 8
    edges = [(i, (i + 1) % n_nodes) for i in range(n_nodes)]
    M0, M1 = build_gather_operators(edges)
    R = 2 * len(edges)

    key = jax.random.PRNGKey(0)
    k_x, k_w1, k_w2 = jax.random.split(key, 3)

    x = jax.random.normal(k_x, (R, hidden_dim), dtype=jnp.float32)

    # Linear weights stored as [in, out] (equivalent to torch's x @ W.T).
    w1 = jax.random.normal(k_w1, (5 * hidden_dim, inner), jnp.float32) \
        * (1.0 / np.sqrt(5 * hidden_dim))
    w2 = jax.random.normal(k_w2, (inner, hidden_dim), jnp.float32) \
        * (1.0 / np.sqrt(inner))

    # BatchNorm1d affine params at default init (weight=1, bias=0).
    g1 = jnp.ones((1, inner), jnp.float32)
    b1 = jnp.zeros((1, inner), jnp.float32)
    g2 = jnp.ones((1, hidden_dim), jnp.float32)
    b2 = jnp.zeros((1, hidden_dim), jnp.float32)

    # One-time prep (per-graph / per-weight-update), hoisted off the call path.
    params = prepare_edge_edge_params(M0, M1, w1, w2, g1, b1, g2, b2)

    out = edge_edge_forward(x, params)
    out = jax.block_until_ready(out)
    assert out.shape == (R, hidden_dim)

    # Tight check against the precision-matched reference (catches structural
    # bugs in the fusion / padding / BN).
    ref_m = jax.block_until_ready(reference_bf16(x, M0, M1, w1, w2,
                                                 g1, b1, g2, b2))
    np.testing.assert_allclose(np.asarray(out), np.asarray(ref_m),
                               rtol=1e-2, atol=1e-2)

    # Loose sanity bound against the full-f32 reference (bf16 matmul inputs
    # introduce a small, bounded precision drift; operators M0/M1 are exact).
    ref_f = jax.block_until_ready(reference(x, M0, M1, w1, w2, g1, b1, g2, b2))
    np.testing.assert_allclose(np.asarray(out), np.asarray(ref_f),
                               rtol=1e-1, atol=1e-1)

    print("KERNEL_OK")
</pallas_src>

<mosaic_0001>
module attributes {stable_mosaic.version = 11 : i64} {
  func.func @edge_edge_kernel(%arg0: i32, %arg1: memref<16x32xf32, #tpu.memory_space<vmem>>, %arg2: memref<16x16xbf16, #tpu.memory_space<vmem>>, %arg3: memref<16x16xbf16, #tpu.memory_space<vmem>>, %arg4: memref<32x128xbf16, #tpu.memory_space<vmem>>, %arg5: memref<32x128xbf16, #tpu.memory_space<vmem>>, %arg6: memref<32x128xbf16, #tpu.memory_space<vmem>>, %arg7: memref<32x128xbf16, #tpu.memory_space<vmem>>, %arg8: memref<32x128xbf16, #tpu.memory_space<vmem>>, %arg9: memref<128x128xbf16, #tpu.memory_space<vmem>>, %arg10: memref<1x128xf32, #tpu.memory_space<vmem>>, %arg11: memref<1x128xf32, #tpu.memory_space<vmem>>, %arg12: memref<1x128xf32, #tpu.memory_space<vmem>>, %arg13: memref<1x128xf32, #tpu.memory_space<vmem>>, %arg14: memref<16x128xf32, #tpu.memory_space<vmem>>) attributes {dimension_semantics = [#tpu.dimension_semantics<arbitrary>], iteration_bounds = array<i64: 1>, scalar_prefetch = 0 : i64, scratch_operands = 0 : i64, tpu.core_type = #tpu.core_type<tc>, window_params = [{pipeline_mode = #tpu.pipeline_mode<synchronous>, transform_indices = @transform_0, window_bounds = array<i64: 16, 32>}, {pipeline_mode = #tpu.pipeline_mode<synchronous>, transform_indices = @transform_1, window_bounds = array<i64: 16, 16>}, {pipeline_mode = #tpu.pipeline_mode<synchronous>, transform_indices = @transform_2, window_bounds = array<i64: 16, 16>}, {pipeline_mode = #tpu.pipeline_mode<synchronous>, transform_indices = @transform_3, window_bounds = array<i64: 32, 128>}, {pipeline_mode = #tpu.pipeline_mode<synchronous>, transform_indices = @transform_4, window_bounds = array<i64: 32, 128>}, {pipeline_mode = #tpu.pipeline_mode<synchronous>, transform_indices = @transform_5, window_bounds = array<i64: 32, 128>}, {pipeline_mode = #tpu.pipeline_mode<synchronous>, transform_indices = @transform_6, window_bounds = array<i64: 32, 128>}, {pipeline_mode = #tpu.pipeline_mode<synchronous>, transform_indices = @transform_7, window_bounds = array<i64: 32, 128>}, {pipeline_mode = #tpu.pipeline_mode<synchronous>, transform_indices = @transform_8, window_bounds = array<i64: 128, 128>}, {pipeline_mode = #tpu.pipeline_mode<synchronous>, transform_indices = @transform_9, window_bounds = array<i64: 1, 128>}, {pipeline_mode = #tpu.pipeline_mode<synchronous>, transform_indices = @transform_10, window_bounds = array<i64: 1, 128>}, {pipeline_mode = #tpu.pipeline_mode<synchronous>, transform_indices = @transform_11, window_bounds = array<i64: 1, 128>}, {pipeline_mode = #tpu.pipeline_mode<synchronous>, transform_indices = @transform_12, window_bounds = array<i64: 1, 128>}, {pipeline_mode = #tpu.pipeline_mode<synchronous>, transform_indices = @transform_13, window_bounds = array<i64: 16, 128>}]} {
    %c0 = arith.constant 0 : index
    %c0_0 = arith.constant 0 : index
    %0 = vector.load %arg1[%c0, %c0_0] : memref<16x32xf32, #tpu.memory_space<vmem>>, vector<16x32xf32>
    %1 = arith.truncf %0 : vector<16x32xf32> to vector<16x32xbf16>
    %c0_1 = arith.constant 0 : index
    %c0_2 = arith.constant 0 : index
    %2 = vector.load %arg2[%c0_1, %c0_2] : memref<16x16xbf16, #tpu.memory_space<vmem>>, vector<16x16xbf16>
    %c0_3 = arith.constant 0 : index
    %c0_4 = arith.constant 0 : index
    %3 = vector.load %arg3[%c0_3, %c0_4] : memref<16x16xbf16, #tpu.memory_space<vmem>>, vector<16x16xbf16>
    %cst = arith.constant dense<0.000000e+00> : vector<16x32xf32>
    %4 = tpu.matmul %2, %1, %cst {dimension_numbers = #tpu.dot_dimension_numbers<[1], [0], [0], [1], [0, 0, 1, 1], [], []>} : vector<16x16xbf16>, vector<16x32xbf16>, vector<16x32xf32> -> vector<16x32xf32>
    %cst_5 = arith.constant dense<0.000000e+00> : vector<16x32xf32>
    %5 = tpu.matmul %3, %1, %cst_5 {dimension_numbers = #tpu.dot_dimension_numbers<[1], [0], [0], [1], [0, 0, 1, 1], [], []>} : vector<16x16xbf16>, vector<16x32xbf16>, vector<16x32xf32> -> vector<16x32xf32>
    %6 = arith.truncf %4 : vector<16x32xf32> to vector<16x32xbf16>
    %7 = arith.truncf %5 : vector<16x32xf32> to vector<16x32xbf16>
    %c0_6 = arith.constant 0 : index
    %c0_7 = arith.constant 0 : index
    %8 = vector.load %arg5[%c0_6, %c0_7] : memref<32x128xbf16, #tpu.memory_space<vmem>>, vector<32x128xbf16>
    %cst_8 = arith.constant dense<0.000000e+00> : vector<16x128xf32>
    %9 = tpu.matmul %6, %8, %cst_8 {dimension_numbers = #tpu.dot_dimension_numbers<[1], [0], [0], [1], [0, 0, 1, 1], [], []>} : vector<16x32xbf16>, vector<32x128xbf16>, vector<16x128xf32> -> vector<16x128xf32>
    %c0_9 = arith.constant 0 : index
    %c0_10 = arith.constant 0 : index
    %10 = vector.load %arg6[%c0_9, %c0_10] : memref<32x128xbf16, #tpu.memory_space<vmem>>, vector<32x128xbf16>
    %cst_11 = arith.constant dense<0.000000e+00> : vector<16x128xf32>
    %11 = tpu.matmul %7, %10, %cst_11 {dimension_numbers = #tpu.dot_dimension_numbers<[1], [0], [0], [1], [0, 0, 1, 1], [], []>} : vector<16x32xbf16>, vector<32x128xbf16>, vector<16x128xf32> -> vector<16x128xf32>
    %12 = arith.addf %9, %11 : vector<16x128xf32>
    %c0_12 = arith.constant 0 : index
    %c0_13 = arith.constant 0 : index
    %13 = vector.load %arg7[%c0_12, %c0_13] : memref<32x128xbf16, #tpu.memory_space<vmem>>, vector<32x128xbf16>
    %cst_14 = arith.constant dense<0.000000e+00> : vector<16x128xf32>
    %14 = tpu.matmul %6, %13, %cst_14 {dimension_numbers = #tpu.dot_dimension_numbers<[1], [0], [0], [1], [0, 0, 1, 1], [], []>} : vector<16x32xbf16>, vector<32x128xbf16>, vector<16x128xf32> -> vector<16x128xf32>
    %c0_15 = arith.constant 0 : index
    %c0_16 = arith.constant 0 : index
    %15 = vector.load %arg8[%c0_15, %c0_16] : memref<32x128xbf16, #tpu.memory_space<vmem>>, vector<32x128xbf16>
    %cst_17 = arith.constant dense<0.000000e+00> : vector<16x128xf32>
    %16 = tpu.matmul %7, %15, %cst_17 {dimension_numbers = #tpu.dot_dimension_numbers<[1], [0], [0], [1], [0, 0, 1, 1], [], []>} : vector<16x32xbf16>, vector<32x128xbf16>, vector<16x128xf32> -> vector<16x128xf32>
    %17 = arith.addf %14, %16 : vector<16x128xf32>
    %c0_18 = arith.constant 0 : index
    %c0_19 = arith.constant 0 : index
    %18 = vector.load %arg4[%c0_18, %c0_19] : memref<32x128xbf16, #tpu.memory_space<vmem>>, vector<32x128xbf16>
    %cst_20 = arith.constant dense<0.000000e+00> : vector<16x128xf32>
    %19 = tpu.matmul %1, %18, %cst_20 {dimension_numbers = #tpu.dot_dimension_numbers<[1], [0], [0], [1], [0, 0, 1, 1], [], []>} : vector<16x32xbf16>, vector<32x128xbf16>, vector<16x128xf32> -> vector<16x128xf32>
    %20 = arith.truncf %12 : vector<16x128xf32> to vector<16x128xbf16>
    %cst_21 = arith.constant dense<0.000000e+00> : vector<16x128xf32>
    %21 = tpu.matmul %2, %20, %cst_21 {dimension_numbers = #tpu.dot_dimension_numbers<[1], [0], [0], [1], [0, 0, 1, 1], [], []>} : vector<16x16xbf16>, vector<16x128xbf16>, vector<16x128xf32> -> vector<16x128xf32>
    %22 = arith.addf %19, %21 : vector<16x128xf32>
    %23 = arith.truncf %17 : vector<16x128xf32> to vector<16x128xbf16>
    %cst_22 = arith.constant dense<0.000000e+00> : vector<16x128xf32>
    %24 = tpu.matmul %3, %23, %cst_22 {dimension_numbers = #tpu.dot_dimension_numbers<[1], [0], [0], [1], [0, 0, 1, 1], [], []>} : vector<16x16xbf16>, vector<16x128xbf16>, vector<16x128xf32> -> vector<16x128xf32>
    %25 = arith.addf %22, %24 : vector<16x128xf32>
    %cst_23 = arith.constant dense<0.000000e+00> : vector<128xf32>
    %26 = vector.multi_reduction <add>, %25, %cst_23 [0] : vector<16x128xf32> to vector<128xf32>
    %27 = vector.shape_cast %26 : vector<128xf32> to vector<1x128xf32>
    %cst_24 = arith.constant 1.600000e+01 : f32
    %28 = vector.broadcast %cst_24 : f32 to vector<1x128xf32>
    %29 = arith.divf %27, %28 : vector<1x128xf32>
    %30 = vector.broadcast %29 : vector<1x128xf32> to vector<16x128xf32>
    %31 = arith.subf %25, %30 : vector<16x128xf32>
    %32 = arith.mulf %31, %31 : vector<16x128xf32>
    %cst_25 = arith.constant dense<0.000000e+00> : vector<128xf32>
    %33 = vector.multi_reduction <add>, %32, %cst_25 [0] : vector<16x128xf32> to vector<128xf32>
    %34 = vector.shape_cast %33 : vector<128xf32> to vector<1x128xf32>
    %cst_26 = arith.constant 1.600000e+01 : f32
    %35 = vector.broadcast %cst_26 : f32 to vector<1x128xf32>
    %36 = arith.divf %34, %35 : vector<1x128xf32>
    %cst_27 = arith.constant 9.99999974E-6 : f32
    %37 = vector.broadcast %cst_27 : f32 to vector<1x128xf32>
    %38 = arith.addf %36, %37 : vector<1x128xf32>
    %39 = math.rsqrt %38 : vector<1x128xf32>
    %40 = vector.broadcast %39 : vector<1x128xf32> to vector<16x128xf32>
    %41 = arith.mulf %31, %40 : vector<16x128xf32>
    %c0_28 = arith.constant 0 : index
    %c0_29 = arith.constant 0 : index
    %42 = vector.load %arg10[%c0_28, %c0_29] : memref<1x128xf32, #tpu.memory_space<vmem>>, vector<1x128xf32>
    %43 = vector.broadcast %42 : vector<1x128xf32> to vector<16x128xf32>
    %44 = arith.mulf %41, %43 : vector<16x128xf32>
    %c0_30 = arith.constant 0 : index
    %c0_31 = arith.constant 0 : index
    %45 = vector.load %arg11[%c0_30, %c0_31] : memref<1x128xf32, #tpu.memory_space<vmem>>, vector<1x128xf32>
    %46 = vector.broadcast %45 : vector<1x128xf32> to vector<16x128xf32>
    %47 = arith.addf %44, %46 : vector<16x128xf32>
    %cst_32 = arith.constant 0.000000e+00 : f32
    %48 = vector.broadcast %cst_32 : f32 to vector<16x128xf32>
    %49 = arith.maximumf %47, %48 : vector<16x128xf32>
    %50 = arith.truncf %49 : vector<16x128xf32> to vector<16x128xbf16>
    %c0_33 = arith.constant 0 : index
    %c0_34 = arith.constant 0 : index
    %51 = vector.load %arg9[%c0_33, %c0_34] : memref<128x128xbf16, #tpu.memory_space<vmem>>, vector<128x128xbf16>
    %cst_35 = arith.constant dense<0.000000e+00> : vector<16x128xf32>
    %52 = tpu.matmul %50, %51, %cst_35 {dimension_numbers = #tpu.dot_dimension_numbers<[1], [0], [0], [1], [0, 0, 1, 1], [], []>} : vector<16x128xbf16>, vector<128x128xbf16>, vector<16x128xf32> -> vector<16x128xf32>
    %cst_36 = arith.constant dense<0.000000e+00> : vector<128xf32>
    %53 = vector.multi_reduction <add>, %52, %cst_36 [0] : vector<16x128xf32> to vector<128xf32>
    %54 = vector.shape_cast %53 : vector<128xf32> to vector<1x128xf32>
    %cst_37 = arith.constant 1.600000e+01 : f32
    %55 = vector.broadcast %cst_37 : f32 to vector<1x128xf32>
    %56 = arith.divf %54, %55 : vector<1x128xf32>
    %57 = vector.broadcast %56 : vector<1x128xf32> to vector<16x128xf32>
    %58 = arith.subf %52, %57 : vector<16x128xf32>
    %59 = arith.mulf %58, %58 : vector<16x128xf32>
    %cst_38 = arith.constant dense<0.000000e+00> : vector<128xf32>
    %60 = vector.multi_reduction <add>, %59, %cst_38 [0] : vector<16x128xf32> to vector<128xf32>
    %61 = vector.shape_cast %60 : vector<128xf32> to vector<1x128xf32>
    %cst_39 = arith.constant 1.600000e+01 : f32
    %62 = vector.broadcast %cst_39 : f32 to vector<1x128xf32>
    %63 = arith.divf %61, %62 : vector<1x128xf32>
    %cst_40 = arith.constant 9.99999974E-6 : f32
    %64 = vector.broadcast %cst_40 : f32 to vector<1x128xf32>
    %65 = arith.addf %63, %64 : vector<1x128xf32>
    %66 = math.rsqrt %65 : vector<1x128xf32>
    %67 = vector.broadcast %66 : vector<1x128xf32> to vector<16x128xf32>
    %68 = arith.mulf %58, %67 : vector<16x128xf32>
    %c0_41 = arith.constant 0 : index
    %c0_42 = arith.constant 0 : index
    %69 = vector.load %arg12[%c0_41, %c0_42] : memref<1x128xf32, #tpu.memory_space<vmem>>, vector<1x128xf32>
    %70 = vector.broadcast %69 : vector<1x128xf32> to vector<16x128xf32>
    %71 = arith.mulf %68, %70 : vector<16x128xf32>
    %c0_43 = arith.constant 0 : index
    %c0_44 = arith.constant 0 : index
    %72 = vector.load %arg13[%c0_43, %c0_44] : memref<1x128xf32, #tpu.memory_space<vmem>>, vector<1x128xf32>
    %73 = vector.broadcast %72 : vector<1x128xf32> to vector<16x128xf32>
    %74 = arith.addf %71, %73 : vector<16x128xf32>
    %cst_45 = arith.constant 0.000000e+00 : f32
    %75 = vector.broadcast %cst_45 : f32 to vector<16x128xf32>
    %76 = arith.maximumf %74, %75 : vector<16x128xf32>
    %c0_46 = arith.constant 0 : index
    %c0_47 = arith.constant 0 : index
    %77 = vector.load %arg14[%c0_46, %c0_47] : memref<16x128xf32, #tpu.memory_space<vmem>>, vector<16x128xf32>
    tpu.vector_store %arg14[%c0_46, %c0_47], %76 {strides = array<i32>} : memref<16x128xf32, #tpu.memory_space<vmem>>, vector<16x128xf32>,
    return
  }
  func.func @transform_0(%arg0: i32) -> (i32, i32) {
    %c0_i32 = arith.constant 0 : i32
    %c0_i32_0 = arith.constant 0 : i32
    %c0_i32_1 = arith.constant 0 : i32
    return %c0_i32, %c0_i32_0 : i32, i32
  }
  func.func @transform_1(%arg0: i32) -> (i32, i32) {
    %c0_i32 = arith.constant 0 : i32
    %c0_i32_0 = arith.constant 0 : i32
    %c0_i32_1 = arith.constant 0 : i32
    return %c0_i32, %c0_i32_0 : i32, i32
  }
  func.func @transform_2(%arg0: i32) -> (i32, i32) {
    %c0_i32 = arith.constant 0 : i32
    %c0_i32_0 = arith.constant 0 : i32
    %c0_i32_1 = arith.constant 0 : i32
    return %c0_i32, %c0_i32_0 : i32, i32
  }
  func.func @transform_3(%arg0: i32) -> (i32, i32) {
    %c0_i32 = arith.constant 0 : i32
    %c0_i32_0 = arith.constant 0 : i32
    %c0_i32_1 = arith.constant 0 : i32
    return %c0_i32, %c0_i32_0 : i32, i32
  }
  func.func @transform_4(%arg0: i32) -> (i32, i32) {
    %c0_i32 = arith.constant 0 : i32
    %c0_i32_0 = arith.constant 0 : i32
    %c0_i32_1 = arith.constant 0 : i32
    return %c0_i32, %c0_i32_0 : i32, i32
  }
  func.func @transform_5(%arg0: i32) -> (i32, i32) {
    %c0_i32 = arith.constant 0 : i32
    %c0_i32_0 = arith.constant 0 : i32
    %c0_i32_1 = arith.constant 0 : i32
    return %c0_i32, %c0_i32_0 : i32, i32
  }
  func.func @transform_6(%arg0: i32) -> (i32, i32) {
    %c0_i32 = arith.constant 0 : i32
    %c0_i32_0 = arith.constant 0 : i32
    %c0_i32_1 = arith.constant 0 : i32
    return %c0_i32, %c0_i32_0 : i32, i32
  }
  func.func @transform_7(%arg0: i32) -> (i32, i32) {
    %c0_i32 = arith.constant 0 : i32
    %c0_i32_0 = arith.constant 0 : i32
    %c0_i32_1 = arith.constant 0 : i32
    return %c0_i32, %c0_i32_0 : i32, i32
  }
  func.func @transform_8(%arg0: i32) -> (i32, i32) {
    %c0_i32 = arith.constant 0 : i32
    %c0_i32_0 = arith.constant 0 : i32
    %c0_i32_1 = arith.constant 0 : i32
    return %c0_i32, %c0_i32_0 : i32, i32
  }
  func.func @transform_9(%arg0: i32) -> (i32, i32) {
    %c0_i32 = arith.constant 0 : i32
    %c0_i32_0 = arith.constant 0 : i32
    %c0_i32_1 = arith.constant 0 : i32
    return %c0_i32, %c0_i32_0 : i32, i32
  }
  func.func @transform_10(%arg0: i32) -> (i32, i32) {
    %c0_i32 = arith.constant 0 : i32
    %c0_i32_0 = arith.constant 0 : i32
    %c0_i32_1 = arith.constant 0 : i32
    return %c0_i32, %c0_i32_0 : i32, i32
  }
  func.func @transform_11(%arg0: i32) -> (i32, i32) {
    %c0_i32 = arith.constant 0 : i32
    %c0_i32_0 = arith.constant 0 : i32
    %c0_i32_1 = arith.constant 0 : i32
    return %c0_i32, %c0_i32_0 : i32, i32
  }
  func.func @transform_12(%arg0: i32) -> (i32, i32) {
    %c0_i32 = arith.constant 0 : i32
    %c0_i32_0 = arith.constant 0 : i32
    %c0_i32_1 = arith.constant 0 : i32
    return %c0_i32, %c0_i32_0 : i32, i32
  }
  func.func @transform_13(%arg0: i32) -> (i32, i32) {
    %c0_i32 = arith.constant 0 : i32
    %c0_i32_0 = arith.constant 0 : i32
    %c0_i32_1 = arith.constant 0 : i32
    return %c0_i32, %c0_i32_0 : i32, i32
  }
}

</mosaic_0001>

<bundles_post_ra>
// kernel: edge_edge_forward.1
= control target key start
LH: loop header
LB: loop body
LE: loop exit
PB: predicated region body
PF: predicated region fallthrough
CT: control target
= control target key end

     0   :  { %18 = vsyncpa [#allocation3], 0  ;;  %s1493_s0 = inlined_call_operand.hbm [shape: f32[16,32], index: 0, kind: input, shape index: {}]   ;;  %s1494_s1 = inlined_call_operand.hbm [shape: bf16[16,16], index: 1, kind: input, shape index: {}]   ;;  %s1495_s2 = inlined_call_operand.hbm [shape: bf16[16,16], index: 2, kind: input, shape index: {}]   ;;  %s1496_s3 = inlined_call_operand.hbm [shape: bf16[32,128], index: 3, kind: input, shape index: {}]   ;;  %s1497_s4 = inlined_call_operand.hbm [shape: bf16[32,128], index: 4, kind: input, shape index: {}]   ;;  %s1498_s5 = inlined_call_operand.hbm [shape: bf16[32,128], index: 5, kind: input, shape index: {}]   ;;  %s1499_s6 = inlined_call_operand.hbm [shape: bf16[32,128], index: 6, kind: input, shape index: {}]   ;;  %s1500_s7 = inlined_call_operand.hbm [shape: bf16[32,128], index: 7, kind: input, shape index: {}]   ;;  %s1501_s8 = inlined_call_operand.hbm [shape: bf16[128,128], index: 8, kind: input, shape index: {}]   ;;  %s1502_s9 = inlined_call_operand.vmem [shape: f32[1,128], index: 9, kind: input, shape index: {}]   ;;  %s1503_s10 = inlined_call_operand.vmem [shape: f32[1,128], index: 10, kind: input, shape index: {}]   ;;  %s1504_s11 = inlined_call_operand.vmem [shape: f32[1,128], index: 11, kind: input, shape index: {}]   ;;  %s1505_s12 = inlined_call_operand.vmem [shape: f32[1,128], index: 12, kind: input, shape index: {}]   ;;  %s1506_s13 = inlined_call_operand.hbm [shape: f32[16,128], index: 13, kind: output, shape index: {}]  }
   0x1   :  { %19 = vsyncpa [#allocation6], 0 }
   0x2   :  { %20 = vsyncpa [#allocation9], 0 }
   0x3   :  { %21 = vsyncpa [#allocation12], 0 }
   0x4   :  { %22 = vsyncpa [#allocation15], 0 }
   0x5   :  { %23 = vsyncpa [#allocation4], 0  ;;  %s1276_s25 = smov [#allocation5]  }
   0x6   :  { %s41_s26 = sshll.u32 %s1276_s25, 4  ;;  %s42_s26 = int_to_ptr.vmem [resolvable:$true] %s41_s26 }
   0x7   :  { %s1072_s27 = scalar_lea.vmem %s42_s26, 128  ;;  %p1077_p1 = scmp.lt.s32.totalorder %s42_s26, %s42_s26 }
   0x8   :  { %p1073_p0 = scmp.ne.s32.totalorder %s42_s26, %s1072_s27  ;;  %p1078_p2 = scmp.lt.s32.totalorder %s1072_s27, %s1072_s27 }
   0xa   :  { %p1079_p3 = por %p1078_p2, %p1077_p1 }
   0xc   :  { %p1080_p4 = pnand %p1079_p3, %p1073_p0 }
   0xe   :  { %1083 = shalt.err (!%p1080_p4)
}
   0xf   :  { %s1277_s28 = smov 64   ;;  %s1278_s29 = smov 4  }
  0x10   :  { %47 = dma.hbm_to_vmem [thread:$0]  %s1494_s1, 128, %s42_s26, [#allocation6], %s1277_s28, %s1277_s28, %s1278_s29  }
  0x11   :  { %s1279_s15 = smov [#allocation8]   ;;  %s1280_s17 = smov [#allocation11]  }
  0x12   :  { %s65_s16 = sshll.u32 %s1279_s15, 4  ;;  %s89_s18 = sshll.u32 %s1280_s17, 4  ;;  %s66_s16 = int_to_ptr.vmem [resolvable:$true] %s65_s16  ;;  %s90_s18 = int_to_ptr.vmem [resolvable:$true] %s89_s18 }
  0x13   :  { %s1092_s19 = scalar_lea.vmem %s66_s16, 256  ;;  %p1097_p6 = scmp.lt.s32.totalorder %s66_s16, %s66_s16 }
  0x14   :  { %p1093_p5 = scmp.ne.s32.totalorder %s66_s16, %s1092_s19  ;;  %p1098_p7 = scmp.lt.s32.totalorder %s1092_s19, %s1092_s19 }
  0x16   :  { %p1099_p8 = por %p1098_p7, %p1097_p6 }
  0x18   :  { %p1100_p9 = pnand %p1099_p8, %p1093_p5 }
  0x1a   :  { %1103 = shalt.err (!%p1100_p9)
}
  0x1b   :  { %71 = dma.hbm_to_vmem [thread:$0]  %s1496_s3, 256, %s66_s16, [#allocation9], %s1277_s28, %s1277_s28, %s1278_s29  }
  0x1c   :  { %s1112_s1 = scalar_lea.vmem %s90_s18, 256  ;;  %p1117_p11 = scmp.lt.s32.totalorder %s90_s18, %s90_s18 }
  0x1d   :  { %p1113_p10 = scmp.ne.s32.totalorder %s90_s18, %s1112_s1  ;;  %p1118_p12 = scmp.lt.s32.totalorder %s1112_s1, %s1112_s1 }
  0x1f   :  { %p1119_p13 = por %p1118_p12, %p1117_p11 }
  0x21   :  { %p1120_p0 = pnand %p1119_p13, %p1113_p10 }
  0x23   :  { %1123 = shalt.err (!%p1120_p0)
}
  0x24   :  { %95 = dma.hbm_to_vmem [thread:$0]  %s1498_s5, 256, %s90_s18, [#allocation12], %s1277_s28, %s1277_s28, %s1278_s29  }
  0x25   :  { %s1281_s24 = smov [#allocation14]   ;;  %s1282_s26 = smov [#allocation2]  }
  0x26   :  { %s113_s25 = sshll.u32 %s1281_s24, 4  ;;  %s29_s3 = sshll.u32 %s1282_s26, 4  ;;  %s114_s25 = int_to_ptr.vmem [resolvable:$true] %s113_s25  ;;  %s30_s3 = int_to_ptr.vmem [resolvable:$true] %s29_s3 }
  0x27   :  { %s1132_s27 = scalar_lea.vmem %s114_s25, 256  ;;  %p1137_p2 = scmp.lt.s32.totalorder %s114_s25, %s114_s25 }
  0x28   :  { %p1133_p1 = scmp.ne.s32.totalorder %s114_s25, %s1132_s27  ;;  %p1138_p3 = scmp.lt.s32.totalorder %s1132_s27, %s1132_s27 }
  0x2a   :  { %p1139_p4 = por %p1138_p3, %p1137_p2 }
  0x2c   :  { %p1140_p5 = pnand %p1139_p4, %p1133_p1 }
  0x2e   :  { %1143 = shalt.err (!%p1140_p5)
}
  0x2f   :  { %119 = dma.hbm_to_vmem [thread:$0]  %s1500_s7, 256, %s114_s25, [#allocation15], %s1277_s28, %s1277_s28, %s1278_s29  }
  0x30   :  { %s1152_s5 = scalar_lea.vmem %s30_s3, 256  ;;  %p1157_p7 = scmp.lt.s32.totalorder %s30_s3, %s30_s3 }
  0x31   :  { %p1153_p6 = scmp.ne.s32.totalorder %s30_s3, %s1152_s5  ;;  %p1158_p8 = scmp.lt.s32.totalorder %s1152_s5, %s1152_s5 }
  0x33   :  { %p1159_p9 = por %p1158_p8, %p1157_p7 }
  0x35   :  { %p1160_p10 = pnand %p1159_p9, %p1153_p6 }
  0x37   :  { %1163 = shalt.err (!%p1160_p10)
}
  0x38   :  { %s1283_s15 = smov 128   ;;  %s1284_s16 = smov 8  }
  0x39   :  { %35 = dma.hbm_to_vmem [thread:$0]  %s1493_s0, 256, %s30_s3, [#allocation3], %s1283_s15, %s1283_s15, %s1284_s16  }
  0x3a   :  { %s1285_s19 = smov [#allocation7]   ;;  %s1286_s7 = smov [#allocation10]  }
  0x3b   :  { %s53_s20 = sshll.u32 %s1285_s19, 4  ;;  %s77_s21 = sshll.u32 %s1286_s7, 4  ;;  %s54_s20 = int_to_ptr.vmem [resolvable:$true] %s53_s20  ;;  %s78_s21 = int_to_ptr.vmem [resolvable:$true] %s77_s21 }
  0x3c   :  { %s1172_s1 = scalar_lea.vmem %s54_s20, 128  ;;  %p1177_p12 = scmp.lt.s32.totalorder %s54_s20, %s54_s20 }
  0x3d   :  { %p1173_p11 = scmp.ne.s32.totalorder %s54_s20, %s1172_s1  ;;  %p1178_p13 = scmp.lt.s32.totalorder %s1172_s1, %s1172_s1 }
  0x3f   :  { %p1179_p0 = por %p1178_p13, %p1177_p12 }
  0x41   :  { %p1180_p1 = pnand %p1179_p0, %p1173_p11 }
  0x43   :  { %1183 = shalt.err (!%p1180_p1)
}
  0x44   :  { %59 = dma.hbm_to_vmem [thread:$0]  %s1495_s2, 128, %s54_s20, [#allocation6], %s1277_s28, %s1277_s28, %s1278_s29  }
  0x45   :  { %s1192_s0 = scalar_lea.vmem %s78_s21, 256  ;;  %p1197_p3 = scmp.lt.s32.totalorder %s78_s21, %s78_s21 }
  0x46   :  { %p1193_p2 = scmp.ne.s32.totalorder %s78_s21, %s1192_s0  ;;  %p1198_p4 = scmp.lt.s32.totalorder %s1192_s0, %s1192_s0 }
  0x48   :  { %p1199_p5 = por %p1198_p4, %p1197_p3 }
  0x4a   :  { %p1200_p6 = pnand %p1199_p5, %p1193_p2 }
  0x4c   :  { %1203 = shalt.err (!%p1200_p6)
}
  0x4d   :  { %83 = dma.hbm_to_vmem [thread:$0]  %s1497_s4, 256, %s78_s21, [#allocation9], %s1277_s28, %s1277_s28, %s1278_s29  }
  0x4e   :  { %s1287_s26 = smov [#allocation13]   ;;  %s1288_s27 = smov [#allocation16]  }
  0x4f   :  { %s101_s3 = sshll.u32 %s1287_s26, 4  ;;  %s125_s2 = sshll.u32 %s1288_s27, 4  ;;  %s102_s3 = int_to_ptr.vmem [resolvable:$true] %s101_s3  ;;  %s126_s2 = int_to_ptr.vmem [resolvable:$true] %s125_s2 }
  0x50   :  { %s1212_s30 = scalar_lea.vmem %s102_s3, 256  ;;  %p1217_p8 = scmp.lt.s32.totalorder %s102_s3, %s102_s3 }
  0x51   :  { %p1213_p7 = scmp.ne.s32.totalorder %s102_s3, %s1212_s30  ;;  %p1218_p9 = scmp.lt.s32.totalorder %s1212_s30, %s1212_s30 }
  0x53   :  { %p1219_p10 = por %p1218_p9, %p1217_p8 }
  0x55   :  { %p1220_p11 = pnand %p1219_p10, %p1213_p7 }
  0x57   :  { %1223 = shalt.err (!%p1220_p11)
}
  0x58   :  { %107 = dma.hbm_to_vmem [thread:$0]  %s1499_s6, 256, %s102_s3, [#allocation12], %s1277_s28, %s1277_s28, %s1278_s29  }
  0x59   :  { %s1232_s4 = scalar_lea.vmem %s126_s2, 1024  ;;  %p1237_p13 = scmp.lt.s32.totalorder %s126_s2, %s126_s2 }
  0x5a   :  { %p1233_p12 = scmp.ne.s32.totalorder %s126_s2, %s1232_s4  ;;  %p1238_p0 = scmp.lt.s32.totalorder %s1232_s4, %s1232_s4 }
  0x5c   :  { %p1239_p1 = por %p1238_p0, %p1237_p13 }
  0x5e   :  { %p1240_p2 = pnand %p1239_p1, %p1233_p12 }
  0x60   :  { %1243 = shalt.err (!%p1240_p2)
}
  0x61   :  { %131 = dma.hbm_to_vmem [thread:$0]  %s1501_s8, 1024, %s126_s2, [#allocation15], %s1277_s28, %s1277_s28, %s1278_s29  }
  0x62   :  { %1264 = dma.done.wait [#allocation3], 256  }
  0x63   :  { %1265 = vsyncadd [#allocation3], 4294967040 }
  0x64   :  { %1266 = dma.done.wait [#allocation6], 256  }
  0x65   :  { %1267 = vsyncadd [#allocation6], 4294967040 }
  0x66   :  { %1268 = dma.done.wait [#allocation9], 512  }
  0x67   :  { %1269 = vsyncadd [#allocation9], 4294966784 }
  0x68   :  { %1270 = dma.done.wait [#allocation12], 512  }
  0x69   :  { %1271 = vsyncadd [#allocation12], 4294966784 }
  0x6a   :  { %1272 = dma.done.wait [#allocation15], 1280  }
  0x6b   :  { %1273 = vsyncadd [#allocation15], 4294966016  ;;  %v1289_v0 = vmov 0.0   ;;  %vm1290_vm0 = vmmov 0   ;;  %v168_v1 = vld [vmem:[#allocation2] sm:$0xff]  ;;  %v169_v2 = vld [vmem:[#allocation2 + $0x8] sm:$0xff] }
  0x6c   :  { %940 = vmatprep.subr.bf16.mxu0 %v1289_v0  ;;  %946 = vmatprep.subr.bf16.mxu1 %v1289_v0  ;;  %v170_v3 = vpack.c.bf16 %v169_v2, %v168_v1  ;;  %v1422_v4 = vld [vmem:[#allocation5] sm:$0xff]   ;;  %vm180_vm1 = vcmask 130048   ;;  %v1424_v5 = vld [vmem:[#allocation7] sm:$0xff]   ;;  %v1042_v6 = vld [vmem:[#allocation11 + $0x8] sm:$0xff]   ;;  %vm296_vm2 = vcmask 261120   ;;  %s1291_s7 = smov [#allocation17]  }
  0x6d   :  { %942 = vmatprep.mubr.msk.bf16.mxu0 %vm1290_vm0, %v1289_v0  ;;  %948 = vmatprep.mubr.msk.bf16.mxu1 %vm1290_vm0, %v1289_v0  ;;  %v1043_v7 = vld [vmem:[#allocation13 + $0x8] sm:$0xff]   ;;  %v1044_v8 = vld [vmem:[#allocation11] sm:$0xff]   ;;  %v1045_v9 = vld [vmem:[#allocation13] sm:$0xff]   ;;  %s859_s21 = sshll.u32 %s1291_s7, 4  ;;  %s860_s21 = int_to_ptr.vmem [resolvable:$true] %s859_s21 }
  0x6e   :  { %941 = vmatpush3.bf16.msra.mxu0 %v170_v3  ;;  %947 = vmatpush3.bf16.msra.mxu1 %v170_v3  ;;  %v1046_v16 = vld [vmem:[#allocation10 + $0x8] sm:$0xff]   ;;  %v1047_v21 = vld [vmem:[#allocation10] sm:$0xff]   ;;  %v1048_v22 = vld [vmem:[#allocation14 + $0x8] sm:$0xff]   ;;  %s1244_s1 = scalar_lea.vmem %s860_s21, 256  ;;  %p1249_p4 = scmp.lt.s32.totalorder %s860_s21, %s860_s21 }
  0x6f   :  { %952 = vmatprep.subr.bf16.mxu0 %v1289_v0  ;;  %976 = vmatprep.subr.bf16.mxu1 %v1289_v0  ;;  %v1049_v23 = vld [vmem:[#allocation14] sm:$0xff]   ;;  %v1050_v24 = vld [vmem:[#allocation8 + $0x8] sm:$0xff]   ;;  %v1054_v54 = vld [vmem:[#allocation16 + $0x28] sm:$0xff]   ;;  %p1245_p3 = scmp.ne.s32.totalorder %s860_s21, %s1244_s1  ;;  %p1250_p5 = scmp.lt.s32.totalorder %s1244_s1, %s1244_s1 }
  0x70   :  { %v1051_v25 = vld [vmem:[#allocation8] sm:$0xff]   ;;  %v1052_v52 = vld [vmem:[#allocation16 + $0x38] sm:$0xff]   ;;  %v1055_v55 = vld [vmem:[#allocation16 + $0x20] sm:$0xff]  }
  0x71   :  { %943 = vmatmul.mubr.msk.bf16.vlgmr.msra.gmra.mxu0 %vm180_vm1, %v1422_v4  ;;  %949 = vmatmul.mubr.msk.bf16.vlgmr.msra.gmra.mxu1 %vm180_vm1, %v1424_v5  ;;  %v1053_v53 = vld [vmem:[#allocation16 + $0x30] sm:$0xff]   ;;  %v1056_v56 = vld [vmem:[#allocation16 + $0x18] sm:$0xff]   ;;  %v1058_v58 = vld [vmem:[#allocation16 + $0x8] sm:$0xff]   ;;  %p1251_p6 = por %p1250_p5, %p1249_p4 }
  0x72   :  { %956 = vmatprep.mubr.msk.bf16.mxu0 %vm1290_vm0, %v1289_v0  ;;  %980 = vmatprep.mubr.msk.bf16.mxu1 %vm1290_vm0, %v1289_v0  ;;  %v1057_v57 = vld [vmem:[#allocation16 + $0x10] sm:$0xff]   ;;  %v1059_v59 = vld [vmem:[#allocation16] sm:$0xff]  }
  0x73   :  { %953 = vmatpush3.bf16.msra.mxu0 %v1042_v6  ;;  %977 = vmatpush3.bf16.msra.mxu1 %v1043_v7  ;;  %p1252_p7 = pnand %p1251_p6, %p1245_p3 }
  0x74   :  { %954 = vmatprep.subr.bf16.mxu0 %v1289_v0  ;;  %978 = vmatprep.subr.bf16.mxu1 %v1289_v0 }
  0x77   :  { %955 = vmatpush3.bf16.msra.mxu0 %v1044_v8  ;;  %979 = vmatpush3.bf16.msra.mxu1 %v1045_v9 }
  0x78   :  { %960 = vmatprep.subr.bf16.mxu0 %v1289_v0  ;;  %990 = vmatprep.subr.bf16.mxu1 %v1289_v0 }
 0x131   :  { %v218_v10 = vpop.f32.mrf.mxu0  ;;  %v267_v11 = vpop.f32.mrf.mxu1 }
 0x133   :  { %v944_v12 = vpop.f32.mrf.mxu0  ;;  %v950_v13 = vpop.f32.mrf.mxu1 }
 0x135   :  { %v221_v14 = vpop.f32.mrf.mxu0  ;;  %v270_v15 = vpop.f32.mrf.mxu1 }
 0x136   :  { %v274_v17 = vpack.c.bf16 %v221_v14, %v218_v10  ;;  %v275_v18 = vpack.c.bf16 %v270_v15, %v267_v11 }
 0x137   :  { %v951_v19 = vpop.f32.mrf.mxu1  ;;  %v945_v20 = vpop.f32.mrf.mxu0 }
 0x138   :  { %957 = vmatmul.mubr.msk.bf16.vlgmr.msra.gmra.mxu0 %vm296_vm2, %v275_v18  ;;  %981 = vmatmul.mubr.msk.bf16.vlgmr.msra.gmra.mxu1 %vm296_vm2, %v274_v17 }
 0x139   :  { %961 = vmatpush3.bf16.msra.mxu0 %v1046_v16  ;;  %964 = vmatprep.mubr.msk.bf16.mxu0 %vm1290_vm0, %v1289_v0 }
 0x13a   :  { %962 = vmatprep.subr.bf16.mxu0 %v1289_v0  ;;  %994 = vmatprep.mubr.msk.bf16.mxu1 %vm1290_vm0, %v1289_v0 }
 0x13b   :  { %991 = vmatpush3.bf16.msra.mxu1 %v1050_v24 }
 0x13c   :  { %992 = vmatprep.subr.bf16.mxu1 %v1289_v0 }
 0x13d   :  { %963 = vmatpush3.bf16.msra.mxu0 %v1047_v21 }
 0x13e   :  { %968 = vmatprep.subr.bf16.mxu0 %v1289_v0 }
 0x13f   :  { %993 = vmatpush3.bf16.msra.mxu1 %v1051_v25 }
 0x140   :  { %965 = vmatmul.mubr.msk.bf16.vlgmr.msra.gmra.mxu0 %vm296_vm2, %v274_v17  ;;  %1004 = vmatprep.subr.bf16.mxu1 %v1289_v0 }
 0x141   :  { %969 = vmatpush3.bf16.msra.mxu0 %v1048_v22  ;;  %972 = vmatprep.mubr.msk.bf16.mxu0 %vm1290_vm0, %v1289_v0 }
 0x142   :  { %970 = vmatprep.subr.bf16.mxu0 %v1289_v0  ;;  %995 = vmatmul.mubr.msk.bf16.vlgmr.msra.gmra.mxu1 %vm296_vm2, %v170_v3 }
 0x143   :  { %1020 = vmatprep.mubr.msk.bf16.mxu1 %vm1290_vm0, %v1289_v0  ;;  %1005 = vmatpush3.bf16.msra.mxu1 %v1052_v52 }
 0x144   :  { %1006 = vmatprep.subr.bf16.mxu1 %v1289_v0 }
 0x145   :  { %971 = vmatpush3.bf16.msra.mxu0 %v1049_v23 }
 0x146   :  { %984 = vmatprep.subr.bf16.mxu0 %v1289_v0 }
 0x147   :  { %1007 = vmatpush3.bf16.msra.mxu1 %v1053_v53 }
 0x148   :  { %973 = vmatmul.mubr.msk.bf16.vlgmr.msra.gmra.mxu0 %vm296_vm2, %v275_v18  ;;  %1008 = vmatprep.subr.bf16.mxu1 %v1289_v0 }
 0x149   :  { %986 = vmatprep.mubr.msk.bf16.mxu0 %vm1290_vm0, %v1289_v0 }
 0x14b   :  { %1009 = vmatpush3.bf16.msra.mxu1 %v1054_v54 }
 0x14c   :  { %1010 = vmatprep.subr.bf16.mxu1 %v1289_v0 }
 0x14f   :  { %1011 = vmatpush3.bf16.msra.mxu1 %v1055_v55 }
 0x150   :  { %1012 = vmatprep.subr.bf16.mxu1 %v1289_v0 }
 0x153   :  { %1013 = vmatpush3.bf16.msra.mxu1 %v1056_v56 }
 0x154   :  { %1014 = vmatprep.subr.bf16.mxu1 %v1289_v0 }
 0x157   :  { %1015 = vmatpush3.bf16.msra.mxu1 %v1057_v57 }
 0x158   :  { %1016 = vmatprep.subr.bf16.mxu1 %v1289_v0 }
 0x15b   :  { %1017 = vmatpush3.bf16.msra.mxu1 %v1058_v58 }
 0x15c   :  { %1018 = vmatprep.subr.bf16.mxu1 %v1289_v0 }
 0x15f   :  { %1019 = vmatpush3.bf16.msra.mxu1 %v1059_v59 }
 0x1f8   :  { %v334_v26 = vpop.f32.mrf.mxu0  ;;  %v504_v27 = vpop.f32.mrf.mxu1 }
 0x1fa   :  { %v958_v28 = vpop.f32.mrf.mxu0  ;;  %v982_v29 = vpop.f32.mrf.mxu1 }
 0x1fc   :  { %v337_v30 = vpop.f32.mrf.mxu0  ;;  %v507_v31 = vpop.f32.mrf.mxu1 }
 0x1fe   :  { %v959_v32 = vpop.f32.mrf.mxu0  ;;  %v983_v33 = vpop.f32.mrf.mxu1 }
 0x1ff   :  { %v897_v33 = vld [vmem:[%s1503_s10] ss:$0 sm:$0xff] }
 0x200   :  { %v390_v34 = vpop.f32.mrf.mxu0 }
 0x201   :  { %v391_v37 = vadd.f32 %v390_v34, %v334_v26 }
 0x202   :  { %v966_v35 = vpop.f32.mrf.mxu0  ;;  %v606_v48 = vpop.f32.mrf.mxu1 }
 0x204   :  { %v393_v36 = vpop.f32.mrf.mxu0  ;;  %v996_v49 = vpop.f32.mrf.mxu1 }
 0x205   :  { %v394_v38 = vadd.f32 %v393_v36, %v337_v30  ;;  %v896_v30 = vld [vmem:[%s1502_s9] ss:$0 sm:$0xff] }
 0x206   :  { %v967_v39 = vpop.f32.mrf.mxu0  ;;  %v609_v50 = vpop.f32.mrf.mxu1 }
 0x207   :  { %v515_v40 = vpack.c.bf16 %v394_v38, %v391_v37 }
 0x208   :  { %v451_v41 = vpop.f32.mrf.mxu0  ;;  %v997_v51 = vpop.f32.mrf.mxu1 }
 0x209   :  { %985 = vmatpush3.bf16.msra.mxu0 %v515_v40  ;;  %v505_v44 = vadd.f32 %v504_v27, %v451_v41 }
 0x20a   :  { %v974_v42 = vpop.f32.mrf.mxu0  ;;  %998 = vmatprep.subr.bf16.mxu0 %v1289_v0 }
 0x20c   :  { %v454_v43 = vpop.f32.mrf.mxu0  ;;  %987 = vmatmul.mubr.msk.bf16.vlgmr.msra.gmra.mxu0 %vm180_vm1, %v1422_v4 }
 0x20d   :  { %v508_v45 = vadd.f32 %v507_v31, %v454_v43  ;;  %1000 = vmatprep.mubr.msk.bf16.mxu0 %vm1290_vm0, %v1289_v0 }
 0x20e   :  { %v975_v46 = vpop.f32.mrf.mxu0 }
 0x20f   :  { %v613_v47 = vpack.c.bf16 %v508_v45, %v505_v44 }
 0x211   :  { %999 = vmatpush3.bf16.msra.mxu0 %v613_v47 }
 0x214   :  { %1001 = vmatmul.mubr.msk.bf16.vlgmr.msra.gmra.mxu0 %vm180_vm1, %v1424_v5 }
 0x2cc   :  { %v550_v60 = vpop.f32.mrf.mxu0 }
 0x2cd   :  { %v607_v3 = vadd.f32 %v606_v48, %v550_v60 }
 0x2ce   :  { %v988_v61 = vpop.f32.mrf.mxu0 }
 0x2d0   :  { %v553_v62 = vpop.f32.mrf.mxu0 }
 0x2d1   :  { %v610_v4 = vadd.f32 %v609_v50, %v553_v62 }
 0x2d2   :  { %v989_v63 = vpop.f32.mrf.mxu0 }
 0x2d4   :  { %v648_v1 = vpop.f32.mrf.mxu0 }
 0x2d5   :  { %v655_v6 = vadd.f32 %v648_v1, %v607_v3 }
 0x2d6   :  { %v1002_v2 = vpop.f32.mrf.mxu0 }
 0x2d8   :  { %v651_v5 = vpop.f32.mrf.mxu0 }
 0x2d9   :  { %v656_v7 = vadd.f32 %v651_v5, %v610_v4  ;;  %v906_v4 = vld [vmem:[%s1504_s11] ss:$0 sm:$0xff] }
 0x2da   :  { %v1003_v8 = vpop.f32.mrf.mxu0 }
 0x2db   :  { %v657_v9 = vadd.f32 %v656_v7, %v655_v6 }
 0x2dd   :  { %v658_v10 = vrot.slane %v657_v9, 4 }
 0x2df   :  { %v659_v11 = vadd.f32 %v658_v10, %v657_v9 }
 0x2e1   :  { %v660_v12 = vrot.slane %v659_v11, 2 }
 0x2e3   :  { %v661_v13 = vadd.f32 %v660_v12, %v659_v11 }
 0x2e5   :  { %v662_v0 = vrot.slane %v661_v13, 1 }
 0x2e7   :  { %v663_v14 = vadd.f32 %v662_v0, %v661_v13 }
 0x2e9   :  { %v665_v15 = vmul.f32 0.0625, %v663_v14 }
 0x2eb   :  { %v666_v16 = vsub.f32 %v655_v6, %v665_v15  ;;  %v667_v17 = vsub.f32 %v656_v7, %v665_v15  ;;  %v907_v7 = vld [vmem:[%s1505_s12] ss:$0 sm:$0xff] }
 0x2ed   :  { %v668_v18 = vmul.f32 %v666_v16, %v666_v16  ;;  %v669_v19 = vmul.f32 %v667_v17, %v667_v17 }
 0x2ef   :  { %v670_v20 = vadd.f32 %v669_v19, %v668_v18 }
 0x2f1   :  { %v671_v21 = vrot.slane %v670_v20, 4 }
 0x2f3   :  { %v672_v22 = vadd.f32 %v671_v21, %v670_v20 }
 0x2f5   :  { %v673_v23 = vrot.slane %v672_v22, 2 }
 0x2f7   :  { %v674_v24 = vadd.f32 %v673_v23, %v672_v22 }
 0x2f9   :  { %v675_v25 = vrot.slane %v674_v24, 1 }
 0x2fb   :  { %v676_v26 = vadd.f32 %v675_v25, %v674_v24 }
 0x2fd   :  { %v677_v27 = vmul.f32 0.0625, %v676_v26 }
 0x2ff   :  { %v678_v28 = vadd.f32 1e-05, %v677_v27 }
 0x301   :  { %1060 = vrsqrt.f32 %v678_v28 }
 0x30e   :  { %v1061_v29 = vpop.eup %1060 }
 0x30f   :  { %v680_v31 = vmul.f32 %v1061_v29, %v666_v16  ;;  %v681_v32 = vmul.f32 %v1061_v29, %v667_v17 }
 0x311   :  { %v689_v34 = vmul.f32 %v896_v30, %v680_v31  ;;  %v690_v35 = vmul.f32 %v896_v30, %v681_v32 }
 0x313   :  { %v699_v36 = vadd.f32 %v897_v33, %v690_v35  ;;  %v698_v37 = vadd.f32 %v897_v33, %v689_v34 }
 0x315   :  { %v701_v38 = vmax.f32 %v699_v36, 0.0  ;;  %v700_v39 = vmax.f32 %v698_v37, 0.0 }
 0x317   :  { %v702_v40 = vpack.c.bf16 %v701_v38, %v700_v39 }
 0x319   :  { %1021 = vmatmul.mubr.bf16.vlgmr.msra.gmra.mxu1 %v702_v40 }
 0x3d9   :  { %v801_v41 = vpop.f32.mrf.mxu1 }
 0x3db   :  { %v1022_v42 = vpop.f32.mrf.mxu1 }
 0x3dd   :  { %v804_v43 = vpop.f32.mrf.mxu1 }
 0x3de   :  { %v808_v44 = vadd.f32 %v804_v43, %v801_v41 }
 0x3df   :  { %v1023_v45 = vpop.f32.mrf.mxu1 }
 0x3e0   :  { %v809_v46 = vrot.slane %v808_v44, 4 }
 0x3e2   :  { %v810_v47 = vadd.f32 %v809_v46, %v808_v44 }
 0x3e4   :  { %v811_v48 = vrot.slane %v810_v47, 2 }
 0x3e6   :  { %v812_v49 = vadd.f32 %v811_v48, %v810_v47 }
 0x3e8   :  { %v813_v50 = vrot.slane %v812_v49, 1 }
 0x3ea   :  { %v814_v51 = vadd.f32 %v813_v50, %v812_v49 }
 0x3ec   :  { %v815_v52 = vmul.f32 0.0625, %v814_v51 }
 0x3ee   :  { %v816_v53 = vsub.f32 %v801_v41, %v815_v52  ;;  %v817_v54 = vsub.f32 %v804_v43, %v815_v52 }
 0x3f0   :  { %v818_v55 = vmul.f32 %v816_v53, %v816_v53  ;;  %v819_v56 = vmul.f32 %v817_v54, %v817_v54 }
 0x3f2   :  { %v820_v57 = vadd.f32 %v819_v56, %v818_v55 }
 0x3f4   :  { %v821_v58 = vrot.slane %v820_v57, 4 }
 0x3f6   :  { %v822_v59 = vadd.f32 %v821_v58, %v820_v57 }
 0x3f8   :  { %v823_v60 = vrot.slane %v822_v59, 2 }
 0x3fa   :  { %v824_v61 = vadd.f32 %v823_v60, %v822_v59 }
 0x3fc   :  { %v825_v62 = vrot.slane %v824_v61, 1 }
 0x3fe   :  { %v826_v63 = vadd.f32 %v825_v62, %v824_v61 }
 0x400   :  { %v827_v1 = vmul.f32 0.0625, %v826_v63 }
 0x402   :  { %v828_v2 = vadd.f32 1e-05, %v827_v1 }
 0x404   :  { %1062 = vrsqrt.f32 %v828_v2 }
 0x411   :  { %v1063_v3 = vpop.eup %1062 }
 0x412   :  { %v830_v5 = vmul.f32 %v1063_v3, %v816_v53  ;;  %v831_v6 = vmul.f32 %v1063_v3, %v817_v54 }
 0x414   :  { %v839_v8 = vmul.f32 %v906_v4, %v830_v5  ;;  %v840_v9 = vmul.f32 %v906_v4, %v831_v6 }
 0x416   :  { %v848_v10 = vadd.f32 %v907_v7, %v839_v8  ;;  %v849_v11 = vadd.f32 %v907_v7, %v840_v9 }
 0x418   :  { %v850_v12 = vmax.f32 %v848_v10, 0.0  ;;  %v851_v13 = vmax.f32 %v849_v11, 0.0 }
 0x41a   :  { %852 = vst [vmem:[#allocation17] sm:$0xff] %v850_v12  ;;  %853 = vst [vmem:[#allocation17 + $0x8] sm:$0xff] %v851_v13 }
 0x41b   :  { %1255 = shalt.err (!%p1252_p7)
}
 0x41c   :  { %865 = dma.vmem_to_hbm [thread:$0]  %s860_s21, 256, %s1506_s13, [#allocation4], %s1283_s15, %s1283_s15, %s1284_s16  }
 0x41d   :  { %1274 = dma.done.wait [#allocation4], 256  }
 0x41e   :  { %1275 = vsyncadd [#allocation4], 4294967040 }
 0x41f   :  { %869 = vsyncpa [#allocation3], 1 }
 0x420   :  { %870 = vsyncpa [#allocation6], 1 }
 0x421   :  { %871 = vsyncpa [#allocation9], 1 }
 0x422   :  { %872 = vsyncpa [#allocation12], 1 }
 0x423   :  { %873 = vsyncpa [#allocation15], 1 }
 0x424   :  { %874 = vsyncpa [#allocation4], 1 }

</bundles_post_ra>
